<compile_context>
chip_gen: v7x
topology: tpu7x:2x2x1
jax: 0.10.0
libtpu: 0.0.40
codegen_flags: <defaults>
</compile_context>

<pallas_src>
import math

import jax
import jax.numpy as jnp
from jax.experimental import pallas as pl
from jax.experimental.pallas import tpu as pltpu


def _round_up(x, m):
    return ((x + m - 1) // m) * m


def _pick_row_tile(rows, max_tile):
    """Largest multiple-of-8 tile <= max_tile that wastes <25% rows as pad."""
    rows8 = _round_up(rows, 8)
    rt = _round_up(min(max_tile, rows8), 8)
    while rt > 8:
        pad = _round_up(rows, rt) - rows
        if pad < 8 or pad * 4 <= rows:
            return rt
        rt = _round_up(rt // 2, 8)
    return 8


# ---------------------------------------------------------------------------
# Grouped linear kernel:  y = x @ W + b   (bf16 operands, f32 accumulate)
# ---------------------------------------------------------------------------
def _linear_kernel(x_ref, w_ref, b_ref, o_ref):
    y = jnp.dot(x_ref[...], w_ref[...], preferred_element_type=jnp.float32)
    o_ref[...] = (y + b_ref[...]).astype(o_ref.dtype)


def _linear_bf16(x2d, w, b2d, *, row_tile=256):
    """x2d: (rows, d_in) bf16;  w: (d_in, d_out) bf16;  b2d: (1, d_out) f32."""
    rows, d_in = x2d.shape
    d_out = w.shape[1]
    rt = _pick_row_tile(rows, row_tile)
    padded = _round_up(rows, rt)
    if padded != rows:
        x2d = jnp.pad(x2d, ((0, padded - rows), (0, 0)))

    out = pl.pallas_call(
        _linear_kernel,
        out_shape=jax.ShapeDtypeStruct((padded, d_out), jnp.bfloat16),
        grid_spec=pltpu.PrefetchScalarGridSpec(
            num_scalar_prefetch=0,
            grid=(padded // rt,),
            in_specs=[
                pl.BlockSpec((rt, d_in), lambda i: (i, 0)),      # x row tile
                pl.BlockSpec((d_in, d_out), lambda i: (0, 0)),   # W resident (bf16)
                pl.BlockSpec((1, d_out), lambda i: (0, 0)),      # bias resident (f32)
            ],
            out_specs=pl.BlockSpec((rt, d_out), lambda i: (i, 0)),
        ),
        compiler_params=pltpu.CompilerParams(
            dimension_semantics=("parallel",),
        ),
    )(x2d, w, b2d)
    return out[:rows]


# ---------------------------------------------------------------------------
# Fused attention + head-merge + output-projection kernel
#   grid = (batch, head_group); head_group axis accumulates into acc_ref
# ---------------------------------------------------------------------------
def _attn_out_kernel(q_ref, k_ref, v_ref, wo_ref, bo_ref, o_ref, acc_ref):
    g = pl.program_id(1)

    @pl.when(g == 0)
    def _():
        acc_ref[...] = jnp.zeros_like(acc_ref)

    q = q_ref[0]   # (G, Sq, d_k)  bf16 (1/sqrt(d_k) already folded into Wq)
    k = k_ref[0]   # (G, Skv, d_k) bf16
    v = v_ref[0]   # (G, Skv, d_k) bf16

    # scores: bf16 MXU operands, f32 accumulation
    s = jnp.einsum('gqd,gkd->gqk', q, k, preferred_element_type=jnp.float32)
    # TODO(synk): attention mask (mask != None) not implemented.

    # numerically stable softmax in f32; normalization deferred to the context
    m = jnp.max(s, axis=-1, keepdims=True)
    p = jnp.exp(s - m)
    denom = jnp.sum(p, axis=-1, keepdims=True)
    # TODO(synk): training-mode dropout on attention probs omitted (eval mode).

    ctx = jnp.einsum('gqk,gkd->gqd', p.astype(v.dtype), v,
                     preferred_element_type=jnp.float32)
    ctx = ctx * pl.reciprocal(denom, approx=True)            # (G, Sq, d_k) f32
    ctx = ctx.astype(wo_ref.dtype)

    # head-merge + output projection: accumulate each head's (Sq, d_k) context
    # through its Wo row-slice into the lane-dense (Sq, D) f32 accumulator.
    num_heads_in_group = q.shape[0]
    for hh in range(num_heads_in_group):
        acc_ref[...] += jnp.dot(ctx[hh], wo_ref[hh],
                                preferred_element_type=jnp.float32)

    @pl.when(g == pl.num_programs(1) - 1)
    def _():
        o_ref[0] = (acc_ref[...] + bo_ref[...]).astype(o_ref.dtype)


# ---------------------------------------------------------------------------
# Full MultiHeadAttention forward
# ---------------------------------------------------------------------------
def multi_head_attention(q, k, v, params, *, h, mask=None, row_tile=256,
                         head_group=None):
    """q: (B, Sq, D); k, v: (B, Skv, D); params = (wq,bq,wk,bk,wv,bv,wo,bo)."""
    assert mask is None  # TODO(synk): mask not implemented
    wq, bq, wk, bk, wv, bv, wo, bo = params
    B, Sq, D = q.shape
    _, Skv, _ = k.shape
    assert D % h == 0, "d_model must be divisible by h"
    d_k = D // h
    scale = jnp.float32(1.0 / math.sqrt(d_k))

    # Fold the 1/sqrt(d_k) score scale into the Q projection (free & exact).
    proj = [(q, wq * scale, bq * scale), (k, wk, bk), (v, wv, bv)]

    # Group consecutive projections that share the same input tensor so their
    # weights can be concatenated along N (self-attention -> one (D, 3D) matmul).
    groups = []
    for x, w, b in proj:
        if groups and groups[-1][0] is x:
            groups[-1][1].append(w)
            groups[-1][2].append(b)
        else:
            groups.append([x, [w], [b]])

    flat = []
    for x, ws, bs in groups:
        rows = x.shape[0] * x.shape[1]
        w_cat = jnp.concatenate(ws, axis=1).astype(jnp.bfloat16)
        b_cat = jnp.concatenate(bs).reshape(1, -1).astype(jnp.float32)
        y = _linear_bf16(x.reshape(rows, D).astype(jnp.bfloat16),
                         w_cat, b_cat, row_tile=row_tile)
        for j in range(len(ws)):
            flat.append(y[:, j * D:(j + 1) * D])
    Qf, Kf, Vf = flat                       # each (rows, D) bf16

    def split_heads(t, S):                  # (B*S, D) -> (B, h, S, d_k)
        return t.reshape(B, S, h, d_k).transpose(0, 2, 1, 3)

    Qh = split_heads(Qf, Sq)
    Kh = split_heads(Kf, Skv)
    Vh = split_heads(Vf, Skv)

    G = h if head_group is None else head_group
    assert h % G == 0, "h must be divisible by head_group"

    wo3 = wo.astype(jnp.bfloat16).reshape(h, d_k, D)   # per-head Wo row slices
    bo2 = bo.reshape(1, D).astype(jnp.float32)

    out = pl.pallas_call(
        _attn_out_kernel,
        out_shape=jax.ShapeDtypeStruct((B, Sq, D), q.dtype),
        grid_spec=pltpu.PrefetchScalarGridSpec(
            num_scalar_prefetch=0,
            grid=(B, h // G),
            in_specs=[
                pl.BlockSpec((1, G, Sq, d_k), lambda b, g: (b, g, 0, 0)),
                pl.BlockSpec((1, G, Skv, d_k), lambda b, g: (b, g, 0, 0)),
                pl.BlockSpec((1, G, Skv, d_k), lambda b, g: (b, g, 0, 0)),
                pl.BlockSpec((G, d_k, D), lambda b, g: (g, 0, 0)),   # Wo slice
                pl.BlockSpec((1, D), lambda b, g: (0, 0)),           # bo resident
            ],
            out_specs=pl.BlockSpec((1, Sq, D), lambda b, g: (b, 0, 0)),
            scratch_shapes=[pltpu.VMEM((Sq, D), jnp.float32)],
        ),
        compiler_params=pltpu.CompilerParams(
            dimension_semantics=("parallel", "arbitrary"),
        ),
    )(Qh, Kh, Vh, wo3, bo2)
    return out


# ---------------------------------------------------------------------------
# Pure-JAX f32 reference
# ---------------------------------------------------------------------------
def mha_ref(q, k, v, params, *, h):
    wq, bq, wk, bk, wv, bv, wo, bo = params
    B, Sq, D = q.shape
    _, Skv, _ = k.shape
    d_k = D // h

    def lin(x, w, b):
        return x.astype(jnp.float32) @ w.astype(jnp.float32) + b.astype(jnp.float32)

    def heads(t, S):
        return t.reshape(B, S, h, d_k).transpose(0, 2, 1, 3)

    Q = heads(lin(q, wq, bq), Sq)
    K = heads(lin(k, wk, bk), Skv)
    V = heads(lin(v, wv, bv), Skv)
    s = jnp.einsum("bhqd,bhkd->bhqk", Q, K) / jnp.sqrt(jnp.float32(d_k))
    p = jax.nn.softmax(s, axis=-1)
    ctx = jnp.einsum("bhqk,bhkd->bhqd", p, V)
    ctx = ctx.transpose(0, 2, 1, 3).reshape(B, Sq, D)
    return lin(ctx, wo, bo).astype(q.dtype)


if __name__ == "__main__":
    key = jax.random.PRNGKey(0)

    def make_params(k, D):
        ks = jax.random.split(k, 8)
        sc = 1.0 / math.sqrt(D)
        return (
            jax.random.normal(ks[0], (D, D), jnp.float32) * sc,
            jax.random.normal(ks[1], (D,), jnp.float32) * 0.01,
            jax.random.normal(ks[2], (D, D), jnp.float32) * sc,
            jax.random.normal(ks[3], (D,), jnp.float32) * 0.01,
            jax.random.normal(ks[4], (D, D), jnp.float32) * sc,
            jax.random.normal(ks[5], (D,), jnp.float32) * 0.01,
            jax.random.normal(ks[6], (D, D), jnp.float32) * sc,
            jax.random.normal(ks[7], (D,), jnp.float32) * 0.01,
        )

    # Config 1: cross-attention-style (distinct q/k/v inputs), B=2, S=8,
    # d_model=128, h=4 (d_k=32); all heads in one attention grid step.
    B, S, D, H = 2, 8, 128, 4
    kq, kk, kv, kp, k2 = jax.random.split(key, 5)
    q = jax.random.normal(kq, (B, S, D), jnp.float32)
    kkk = jax.random.normal(kk, (B, S, D), jnp.float32)
    vvv = jax.random.normal(kv, (B, S, D), jnp.float32)
    params = make_params(kp, D)

    out = multi_head_attention(q, kkk, vvv, params, h=H)
    out = jax.block_until_ready(out)
    ref = mha_ref(q, kkk, vvv, params, h=H)
    assert out.shape == (B, S, D)
    err = float(jnp.max(jnp.abs(out - ref)))
    assert jnp.allclose(out, ref, atol=1e-1, rtol=1e-1), f"mismatch (max abs diff {err})"

    # Config 2: self-attention (exercises the fused (D, 3D) QKV projection,
    # the small-row-tile pad path, and multi-step head-group accumulation).
    B2, S2 = 3, 8
    q2 = jax.random.normal(k2, (B2, S2, D), jnp.float32)
    out2 = multi_head_attention(q2, q2, q2, params, h=H, row_tile=16, head_group=2)
    out2 = jax.block_until_ready(out2)
    ref2 = mha_ref(q2, q2, q2, params, h=H)
    err2 = float(jnp.max(jnp.abs(out2 - ref2)))
    assert jnp.allclose(out2, ref2, atol=1e-1, rtol=1e-1), f"mismatch (max abs diff {err2})"

    print("KERNEL_OK")
</pallas_src>

<mosaic_0001>
module attributes {stable_mosaic.version = 11 : i64} {
  func.func @_linear_kernel(%arg0: i32, %arg1: memref<16x128xbf16, #tpu.memory_space<vmem>>, %arg2: memref<128x128xbf16, #tpu.memory_space<vmem>>, %arg3: memref<1x128xf32, #tpu.memory_space<vmem>>, %arg4: memref<16x128xbf16, #tpu.memory_space<vmem>>) attributes {dimension_semantics = [#tpu.dimension_semantics<parallel>], iteration_bounds = array<i64: 1>, scalar_prefetch = 0 : i64, scratch_operands = 0 : i64, tpu.core_type = #tpu.core_type<tc>, window_params = [{transform_indices = @transform_0, window_bounds = array<i64: 16, 128>}, {pipeline_mode = #tpu.pipeline_mode<synchronous>, transform_indices = @transform_1, window_bounds = array<i64: 128, 128>}, {pipeline_mode = #tpu.pipeline_mode<synchronous>, transform_indices = @transform_2, window_bounds = array<i64: 1, 128>}, {transform_indices = @transform_3, window_bounds = array<i64: 16, 128>}]} {
    %c0 = arith.constant 0 : index
    %c0_0 = arith.constant 0 : index
    %0 = vector.load %arg1[%c0, %c0_0] : memref<16x128xbf16, #tpu.memory_space<vmem>>, vector<16x128xbf16>
    %c0_1 = arith.constant 0 : index
    %c0_2 = arith.constant 0 : index
    %1 = vector.load %arg2[%c0_1, %c0_2] : memref<128x128xbf16, #tpu.memory_space<vmem>>, vector<128x128xbf16>
    %cst = arith.constant dense<0.000000e+00> : vector<16x128xf32>
    %2 = tpu.matmul %0, %1, %cst {dimension_numbers = #tpu.dot_dimension_numbers<[1], [0], [0], [1], [0, 0, 1, 1], [], []>} : vector<16x128xbf16>, vector<128x128xbf16>, vector<16x128xf32> -> vector<16x128xf32>
    %c0_3 = arith.constant 0 : index
    %c0_4 = arith.constant 0 : index
    %3 = vector.load %arg3[%c0_3, %c0_4] : memref<1x128xf32, #tpu.memory_space<vmem>>, vector<1x128xf32>
    %4 = vector.broadcast %3 : vector<1x128xf32> to vector<16x128xf32>
    %5 = arith.addf %2, %4 : vector<16x128xf32>
    %6 = arith.truncf %5 : vector<16x128xf32> to vector<16x128xbf16>
    %c0_5 = arith.constant 0 : index
    %c0_6 = arith.constant 0 : index
    %7 = vector.load %arg4[%c0_5, %c0_6] : memref<16x128xbf16, #tpu.memory_space<vmem>>, vector<16x128xbf16>
    tpu.vector_store %arg4[%c0_5, %c0_6], %6 {strides = array<i32>} : memref<16x128xbf16, #tpu.memory_space<vmem>>, vector<16x128xbf16>,
    return
  }
  func.func @transform_0(%arg0: i32) -> (i32, i32) {
    %c0_i32 = arith.constant 0 : i32
    %c0_i32_0 = arith.constant 0 : i32
    return %arg0, %c0_i32 : i32, i32
  }
  func.func @transform_1(%arg0: i32) -> (i32, i32) {
    %c0_i32 = arith.constant 0 : i32
    %c0_i32_0 = arith.constant 0 : i32
    %c0_i32_1 = arith.constant 0 : i32
    return %c0_i32, %c0_i32_0 : i32, i32
  }
  func.func @transform_2(%arg0: i32) -> (i32, i32) {
    %c0_i32 = arith.constant 0 : i32
    %c0_i32_0 = arith.constant 0 : i32
    %c0_i32_1 = arith.constant 0 : i32
    return %c0_i32, %c0_i32_0 : i32, i32
  }
  func.func @transform_3(%arg0: i32) -> (i32, i32) {
    %c0_i32 = arith.constant 0 : i32
    %c0_i32_0 = arith.constant 0 : i32
    return %arg0, %c0_i32 : i32, i32
  }
}

</mosaic_0001>

<bundles_post_ra>
// kernel: tpu_custom_call.1
= control target key start
LH: loop header
LB: loop body
LE: loop exit
PB: predicated region body
PF: predicated region fallthrough
CT: control target
= control target key end

     0   :  { %8 = vsyncpa [#allocation3], 0  ;;  %s403_s0 = inlined_call_operand.hbm [shape: bf16[16,128], index: 0, kind: input, shape index: {}]   ;;  %s404_s1 = inlined_call_operand.hbm [shape: bf16[128,128], index: 1, kind: input, shape index: {}]   ;;  %s405_s2 = inlined_call_operand.vmem [shape: f32[1,128], index: 2, kind: input, shape index: {}]   ;;  %s406_s3 = inlined_call_operand.hbm [shape: bf16[16,128], index: 3, kind: output, shape index: {}]  }
   0x1   :  { %9 = vsyncpa [#allocation6], 0 }
   0x2   :  { %10 = vsyncpa [#allocation4], 0  ;;  %s328_s12 = smov [#allocation2]   ;;  %s256_s16 = scalar_lea.hbm %s403_s0, 128 }
   0x3   :  { %s16_s13 = sshll.u32 %s328_s12, 4  ;;  %p257_p0 = scmp.ne.s32.totalorder %s403_s0, %s256_s16  ;;  %s17_s13 = int_to_ptr.vmem [resolvable:$true] %s16_s13 }
   0x4   :  { %p260_p1 = scmp.lt.u32.totalorder %s256_s16, %s403_s0 }
   0x6   :  { %p262_p2 = pnand %p260_p1, %p257_p0 }
   0x8   :  { %265 = shalt.err (!%p262_p2)
}
   0x9   :  { %s266_s21 = scalar_lea.vmem %s17_s13, 128  ;;  %p271_p4 = scmp.lt.s32.totalorder %s17_s13, %s17_s13 }
   0xa   :  { %p267_p3 = scmp.ne.s32.totalorder %s17_s13, %s266_s21  ;;  %p272_p5 = scmp.lt.s32.totalorder %s266_s21, %s266_s21 }
   0xc   :  { %p273_p6 = por %p272_p5, %p271_p4 }
   0xe   :  { %p274_p7 = pnand %p273_p6, %p267_p3 }
  0x10   :  { %277 = shalt.err (!%p274_p7)
}
  0x11   :  { %s329_s22 = smov 64   ;;  %s330_s23 = smov 4  }
  0x12   :  { %22 = dma.hbm_to_vmem [thread:$0]  %s403_s0, 128, %s17_s13, [#allocation3], %s329_s22, %s329_s22, %s330_s23  }
  0x13   :  { %s331_s26 = smov [#allocation5]   ;;  %s278_s30 = scalar_lea.hbm %s404_s1, 1024 }
  0x14   :  { %s28_s27 = sshll.u32 %s331_s26, 4  ;;  %p279_p8 = scmp.ne.s32.totalorder %s404_s1, %s278_s30  ;;  %s29_s27 = int_to_ptr.vmem [resolvable:$true] %s28_s27 }
  0x15   :  { %p282_p9 = scmp.lt.u32.totalorder %s278_s30, %s404_s1 }
  0x17   :  { %p284_p10 = pnand %p282_p9, %p279_p8 }
  0x19   :  { %287 = shalt.err (!%p284_p10)
}
  0x1a   :  { %s288_s8 = scalar_lea.vmem %s29_s27, 1024  ;;  %p293_p12 = scmp.lt.s32.totalorder %s29_s27, %s29_s27 }
  0x1b   :  { %p289_p11 = scmp.ne.s32.totalorder %s29_s27, %s288_s8  ;;  %p294_p13 = scmp.lt.s32.totalorder %s288_s8, %s288_s8 }
  0x1d   :  { %p295_p0 = por %p294_p13, %p293_p12 }
  0x1f   :  { %p296_p1 = pnand %p295_p0, %p289_p11 }
  0x21   :  { %299 = shalt.err (!%p296_p1)
}
  0x22   :  { %34 = dma.hbm_to_vmem [thread:$0]  %s404_s1, 1024, %s29_s27, [#allocation6], %s329_s22, %s329_s22, %s330_s23  }
  0x23   :  { %322 = dma.done.wait [#allocation3], 128  }
  0x24   :  { %323 = vsyncadd [#allocation3], 4294967168 }
  0x25   :  { %324 = dma.done.wait [#allocation6], 1024  }
  0x26   :  { %325 = vsyncadd [#allocation6], 4294966272  ;;  %v332_v0 = vmov 0.0   ;;  %vm333_vm0 = vmmov 0   ;;  %v247_v1 = vld [vmem:[#allocation5] sm:$0xff]   ;;  %v248_v2 = vld [vmem:[#allocation5 + $0x8] sm:$0xff]  }
  0x27   :  { %220 = vmatprep.subr.bf16.mxu0 %v332_v0  ;;  %236 = vmatprep.mubr.msk.bf16.mxu0 %vm333_vm0, %v332_v0  ;;  %v249_v3 = vld [vmem:[#allocation5 + $0x10] sm:$0xff]   ;;  %v250_v4 = vld [vmem:[#allocation5 + $0x18] sm:$0xff]   ;;  %v251_v5 = vld [vmem:[#allocation5 + $0x20] sm:$0xff]   ;;  %s334_s11 = smov [#allocation7]  }
  0x28   :  { %221 = vmatpush3.bf16.msra.mxu0 %v247_v1  ;;  %v252_v6 = vld [vmem:[#allocation5 + $0x28] sm:$0xff]   ;;  %v253_v7 = vld [vmem:[#allocation5 + $0x30] sm:$0xff]   ;;  %v254_v8 = vld [vmem:[#allocation5 + $0x38] sm:$0xff]   ;;  %s179_s12 = sshll.u32 %s334_s11, 4  ;;  %s180_s12 = int_to_ptr.vmem [resolvable:$true] %s179_s12 }
  0x29   :  { %222 = vmatprep.subr.bf16.mxu0 %v332_v0  ;;  %v255_v9 = vld [vmem:[#allocation2] sm:$0xff]   ;;  %s300_s13 = scalar_lea.vmem %s180_s12, 128  ;;  %p305_p3 = scmp.lt.s32.totalorder %s180_s12, %s180_s12 }
  0x2a   :  { %v192_v10 = vld [vmem:[%s405_s2] ss:$0 sm:$0xff]  ;;  %p301_p2 = scmp.ne.s32.totalorder %s180_s12, %s300_s13  ;;  %p306_p4 = scmp.lt.s32.totalorder %s300_s13, %s300_s13 }
  0x2c   :  { %223 = vmatpush3.bf16.msra.mxu0 %v248_v2  ;;  %p307_p5 = por %p306_p4, %p305_p3 }
  0x2d   :  { %224 = vmatprep.subr.bf16.mxu0 %v332_v0 }
  0x2e   :  { %p308_p6 = pnand %p307_p5, %p301_p2 }
  0x30   :  { %225 = vmatpush3.bf16.msra.mxu0 %v249_v3 }
  0x31   :  { %226 = vmatprep.subr.bf16.mxu0 %v332_v0 }
  0x34   :  { %227 = vmatpush3.bf16.msra.mxu0 %v250_v4 }
  0x35   :  { %228 = vmatprep.subr.bf16.mxu0 %v332_v0 }
  0x38   :  { %229 = vmatpush3.bf16.msra.mxu0 %v251_v5 }
  0x39   :  { %230 = vmatprep.subr.bf16.mxu0 %v332_v0 }
  0x3c   :  { %231 = vmatpush3.bf16.msra.mxu0 %v252_v6 }
  0x3d   :  { %232 = vmatprep.subr.bf16.mxu0 %v332_v0 }
  0x40   :  { %233 = vmatpush3.bf16.msra.mxu0 %v253_v7 }
  0x41   :  { %234 = vmatprep.subr.bf16.mxu0 %v332_v0 }
  0x44   :  { %235 = vmatpush3.bf16.msra.mxu0 %v254_v8 }
  0x47   :  { %237 = vmatmul.mubr.bf16.vlgmr.msra.gmra.mrb[0].mxu0 %v255_v9 }
 0x11a   :  { %v157_v11 = vpop.f32.mrb[0].mxu0 }
 0x11b   :  { %v238_v12 = vpop.f32.mrb[1].mxu0  ;;  %v158_v14 = vadd.f32 %v192_v10, %v157_v11 }
 0x11c   :  { %v160_v13 = vpop.f32.mrb[2].mxu0 }
 0x11d   :  { %v161_v15 = vadd.f32 %v192_v10, %v160_v13  ;;  %v239_v16 = vpop.f32.mrb[3].mxu0 }
 0x11f   :  { %v209_v17 = vpack.c.bf16 %v161_v15, %v158_v14 }
 0x121   :  { %210 = vst [vmem:[#allocation7] sm:$0xff] %v209_v17  }
 0x122   :  { %311 = shalt.err (!%p308_p6)
}
 0x123   :  { %s312_s15 = scalar_lea.hbm %s406_s3, 128 }
 0x124   :  { %p313_p7 = scmp.ne.s32.totalorder %s406_s3, %s312_s15  ;;  %p316_p8 = scmp.lt.u32.totalorder %s312_s15, %s406_s3 }
 0x126   :  { %p318_p9 = pnand %p316_p8, %p313_p7 }
 0x128   :  { %321 = shalt.err (!%p318_p9)
}
 0x129   :  { %185 = dma.vmem_to_hbm [thread:$0]  %s180_s12, 128, %s406_s3, [#allocation4], %s329_s22, %s329_s22, %s330_s23  }
 0x12a   :  { %326 = dma.done.wait [#allocation4], 128  }
 0x12b   :  { %327 = vsyncadd [#allocation4], 4294967168 }
 0x12c   :  { %189 = vsyncpa [#allocation3], 1 }
 0x12d   :  { %190 = vsyncpa [#allocation6], 1 }
 0x12e   :  { %191 = vsyncpa [#allocation4], 1 }

</bundles_post_ra>
